<compile_context>
chip_gen: v7x
topology: tpu7x:2x2x1
jax: 0.10.0
libtpu: 0.0.40
codegen_flags: <defaults>
</compile_context>

<pallas_src>
import jax
import jax.numpy as jnp
from jax.experimental import pallas as pl
from jax.experimental.pallas import tpu as pltpu

_MiB = 1024 * 1024
_LANES = 512                       # lane-dense slab width (4 * 128 lanes)
_SPLIT_THRESHOLD_BYTES = 2 * _MiB  # above this, force >= 2 blocks (megacore)


def _cdiv(a: int, b: int) -> int:
    return -(-a // b)


def _round_up(a: int, b: int) -> int:
    return _cdiv(a, b) * b


def _silu_kernel(x_ref, o_ref):
    # f(x) = x * sigmoid(x)  -- the lambda applied by the Lambda module.
    x = x_ref[...]
    xf = x if x.dtype == jnp.float32 else x.astype(jnp.float32)
    o_ref[...] = (xf * jax.nn.sigmoid(xf)).astype(o_ref.dtype)


def _hw_block_params():
    """Generation-aware (block_bytes_per_buffer, vmem_limit_bytes)."""
    phys_vmem = None
    try:
        phys_vmem = int(getattr(pltpu.get_tpu_info(), "vmem_capacity_bytes"))
    except Exception:
        phys_vmem = None
    if phys_vmem is not None and phys_vmem <= 64 * _MiB:
        # v7x-class: 64 MiB physical VMEM, ~3.2 TB/s HBM.  Bigger blocks to
        # amortize the ~0.35 us grid-step cost; double-buffered in+out is
        # 4 x 8 MiB = 32 MiB live, so raise the scoped limit to 40 MiB.
        return 8 * _MiB, 40 * _MiB
    # v5e / v6e (128 MiB physical VMEM) or unknown: 4 MiB blocks -> 16 MiB of
    # live buffers.  Set the scoped limit explicitly to 32 MiB because v5e's
    # default is only 16 MiB.
    return 4 * _MiB, 32 * _MiB


def lambda_apply(
    x: jax.Array,
    *,
    lanes: int = _LANES,
    block_bytes: int | None = None,
    vmem_limit_bytes: int | None = None,
    split_threshold_bytes: int = _SPLIT_THRESHOLD_BYTES,
) -> jax.Array:
    """Apply the Lambda module's function f (SiLU) elementwise via Pallas."""
    orig_shape = x.shape
    dtype = x.dtype
    total = x.size
    if total == 0:
        return x

    hw_block, hw_limit = _hw_block_params()
    if block_bytes is None:
        block_bytes = hw_block
    if vmem_limit_bytes is None:
        vmem_limit_bytes = hw_limit

    itemsize = jnp.dtype(dtype).itemsize
    # Packed-sublane minimum: 8 rows for 32-bit, 16 for bf16, 32 for int8/fp8.
    sub_min = max(8, 32 // itemsize)
    total_bytes = total * itemsize

    compiler_params = pltpu.CompilerParams(
        dimension_semantics=("parallel",),
        vmem_limit_bytes=vmem_limit_bytes,
    )

    if total % lanes == 0:
        # ---- Lane-aligned path: zero-copy reshape to a (rows, lanes) slab. --
        rows = total // lanes
        x2d = x.reshape(rows, lanes)
        row_bytes = lanes * itemsize
        max_rows = max(sub_min, (block_bytes // row_bytes) // sub_min * sub_min)
        if rows <= max_rows:
            if total_bytes > split_threshold_bytes and rows >= 2 * sub_min:
                # Force >= 2 blocks so both TensorCores run on multi-TC chips.
                tile_rows = _round_up(_cdiv(rows, 2), sub_min)
            else:
                tile_rows = rows  # full-extent block (always legal)
        else:
            tile_rows = max_rows
        grid = (_cdiv(rows, tile_rows),)

        out2d = pl.pallas_call(
            _silu_kernel,
            out_shape=jax.ShapeDtypeStruct((rows, lanes), dtype),
            grid_spec=pltpu.PrefetchScalarGridSpec(
                num_scalar_prefetch=0,
                grid=grid,
                in_specs=[pl.BlockSpec((tile_rows, lanes), lambda i: (i, 0))],
                out_specs=pl.BlockSpec((tile_rows, lanes), lambda i: (i, 0)),
            ),
            compiler_params=compiler_params,
        )(x2d)
        return out2d.reshape(orig_shape)

    # ---- Ragged path: 1-D grid over the flat array (no pad / no slice). ----
    # Block size is a multiple of sub_min * 128 elements; Pallas masks the
    # partial trailing block on writeback, so no extra HBM passes are needed.
    x1d = x.reshape(total)
    unit = sub_min * 128
    max_elems = max(unit, (block_bytes // itemsize) // unit * unit)
    if total <= max_elems:
        if total_bytes > split_threshold_bytes and total >= 2 * unit:
            tile_elems = _round_up(_cdiv(total, 2), unit)
        else:
            tile_elems = total  # block equals full array extent (always legal)
    else:
        tile_elems = max_elems
    grid = (_cdiv(total, tile_elems),)

    out1d = pl.pallas_call(
        _silu_kernel,
        out_shape=jax.ShapeDtypeStruct((total,), dtype),
        grid_spec=pltpu.PrefetchScalarGridSpec(
            num_scalar_prefetch=0,
            grid=grid,
            in_specs=[pl.BlockSpec((tile_elems,), lambda i: (i,))],
            out_specs=pl.BlockSpec((tile_elems,), lambda i: (i,)),
        ),
        compiler_params=compiler_params,
    )(x1d)
    return out1d.reshape(orig_shape)


def lambda_reference(x: jax.Array) -> jax.Array:
    xf = x.astype(jnp.float32)
    return (xf * jax.nn.sigmoid(xf)).astype(x.dtype)


if __name__ == "__main__":
    key = jax.random.PRNGKey(0)

    # 1) NCHW input (as a PyTorch Lambda layer would typically see).
    #    2048 elems -> lane-aligned 2-D path, single full-extent block.
    x = jax.random.normal(key, (2, 4, 16, 16), dtype=jnp.float32)
    out = jax.block_until_ready(lambda_apply(x))
    assert out.shape == x.shape and out.dtype == x.dtype
    assert jnp.max(jnp.abs(out - lambda_reference(x))) < 1e-5

    # 2) Lane-aligned multi-block path (shrink block target to force tiling).
    x2 = jax.random.normal(jax.random.PRNGKey(1), (2, 8, 32, 32), jnp.float32)
    out2 = jax.block_until_ready(lambda_apply(x2, block_bytes=16 * 1024))
    assert jnp.max(jnp.abs(out2 - lambda_reference(x2))) < 1e-5

    # 3) Megacore split path: single-block-sized slab forced into 2 blocks.
    out2b = jax.block_until_ready(
        lambda_apply(x2, split_threshold_bytes=16 * 1024))
    assert jnp.max(jnp.abs(out2b - lambda_reference(x2))) < 1e-5

    # 4) Ragged size, single block (no pad/slice, block == full 1-D extent).
    x3 = jax.random.normal(jax.random.PRNGKey(2), (3, 5, 7, 11), jnp.float32)
    out3 = jax.block_until_ready(lambda_apply(x3))
    assert out3.shape == x3.shape
    assert jnp.max(jnp.abs(out3 - lambda_reference(x3))) < 1e-5

    # 5) Ragged size, multi-block 1-D path with a masked partial trailing block.
    x4 = jax.random.normal(jax.random.PRNGKey(3), (8, 625), jnp.float32)
    out4 = jax.block_until_ready(lambda_apply(x4, block_bytes=4 * 1024))
    assert jnp.max(jnp.abs(out4 - lambda_reference(x4))) < 1e-5

    # 6) bf16 coverage (sub_min = 16, identical f32 compute path).
    x5 = jax.random.normal(jax.random.PRNGKey(4), (4, 128, 4), jnp.bfloat16)
    out5 = jax.block_until_ready(lambda_apply(x5))
    assert out5.dtype == jnp.bfloat16
    assert jnp.max(jnp.abs(out5.astype(jnp.float32)
                           - lambda_reference(x5).astype(jnp.float32))) < 1e-2

    print("KERNEL_OK")
</pallas_src>

<mosaic_0001>
module attributes {stable_mosaic.version = 11 : i64} {
  func.func @_silu_kernel(%arg0: i32, %arg1: memref<4x512xf32, #tpu.memory_space<vmem>>, %arg2: memref<4x512xf32, #tpu.memory_space<vmem>>) attributes {dimension_semantics = [#tpu.dimension_semantics<parallel>], iteration_bounds = array<i64: 1>, scalar_prefetch = 0 : i64, scratch_operands = 0 : i64, tpu.core_type = #tpu.core_type<tc>, window_params = [{transform_indices = @transform_0, window_bounds = array<i64: 4, 512>}, {transform_indices = @transform_1, window_bounds = array<i64: 4, 512>}]} {
    %c0 = arith.constant 0 : index
    %c0_0 = arith.constant 0 : index
    %0 = vector.load %arg1[%c0, %c0_0] : memref<4x512xf32, #tpu.memory_space<vmem>>, vector<4x512xf32>
    %1 = arith.negf %0 : vector<4x512xf32>
    %2 = math.exp %1 : vector<4x512xf32>
    %cst = arith.constant 1.000000e+00 : f32
    %3 = vector.broadcast %cst : f32 to vector<4x512xf32>
    %4 = arith.addf %3, %2 : vector<4x512xf32>
    %5 = arith.divf %3, %4 : vector<4x512xf32>
    %6 = arith.mulf %0, %5 : vector<4x512xf32>
    %c0_1 = arith.constant 0 : index
    %c0_2 = arith.constant 0 : index
    %7 = vector.load %arg2[%c0_1, %c0_2] : memref<4x512xf32, #tpu.memory_space<vmem>>, vector<4x512xf32>
    tpu.vector_store %arg2[%c0_1, %c0_2], %6 {strides = array<i32>} : memref<4x512xf32, #tpu.memory_space<vmem>>, vector<4x512xf32>,
    return
  }
  func.func @transform_0(%arg0: i32) -> (i32, i32) {
    %c0_i32 = arith.constant 0 : i32
    %c0_i32_0 = arith.constant 0 : i32
    return %arg0, %c0_i32 : i32, i32
  }
  func.func @transform_1(%arg0: i32) -> (i32, i32) {
    %c0_i32 = arith.constant 0 : i32
    %c0_i32_0 = arith.constant 0 : i32
    return %arg0, %c0_i32 : i32, i32
  }
}

</mosaic_0001>

<bundles_post_ra>
// kernel: tpu_custom_call.1
= control target key start
LH: loop header
LB: loop body
LE: loop exit
PB: predicated region body
PF: predicated region fallthrough
CT: control target
= control target key end

     0   :  { %6 = vsyncpa [#allocation3], 0  ;;  %s150_s0 = inlined_call_operand.hbm [shape: f32[4,512], index: 0, kind: input, shape index: {}]   ;;  %s151_s1 = inlined_call_operand.hbm [shape: f32[4,512], index: 1, kind: output, shape index: {}]  }
   0x1   :  { %7 = vsyncpa [#allocation4], 0  ;;  %s114_s6 = smov [#allocation2]   ;;  %s66_s10 = scalar_lea.hbm %s150_s0, 256 }
   0x2   :  { %s14_s7 = sshll.u32 %s114_s6, 4  ;;  %p67_p0 = scmp.ne.s32.totalorder %s150_s0, %s66_s10  ;;  %s15_s7 = int_to_ptr.vmem [resolvable:$true] %s14_s7 }
   0x3   :  { %p70_p1 = scmp.lt.u32.totalorder %s66_s10, %s150_s0 }
   0x5   :  { %p72_p2 = pnand %p70_p1, %p67_p0 }
   0x7   :  { %75 = shalt.err (!%p72_p2)
}
   0x8   :  { %s76_s15 = scalar_lea.vmem %s15_s7, 256  ;;  %p81_p4 = scmp.lt.s32.totalorder %s15_s7, %s15_s7 }
   0x9   :  { %p77_p3 = scmp.ne.s32.totalorder %s15_s7, %s76_s15  ;;  %p82_p5 = scmp.lt.s32.totalorder %s76_s15, %s76_s15 }
   0xb   :  { %p83_p6 = por %p82_p5, %p81_p4 }
   0xd   :  { %p84_p7 = pnand %p83_p6, %p77_p3 }
   0xf   :  { %87 = shalt.err (!%p84_p7)
}
  0x10   :  { %17 = dma.hbm_to_vmem [thread:$0]  %s150_s0, 256, %s15_s7, [#allocation3]  }
  0x11   :  { %110 = dma.done.wait [#allocation3], 256  }
  0x12   :  { %111 = vsyncadd [#allocation3], 4294967040  ;;  %v21_v0 = vld [vmem:[#allocation2] sm:$0xff]  ;;  %v22_v1 = vld [vmem:[#allocation2 + $0x8] sm:$0xff]  ;;  %s115_s18 = smov [#allocation5]  }
  0x13   :  { %v54_v2 = vmul.f32 -1.442695, %v21_v0  ;;  %v55_v3 = vmul.f32 -1.442695, %v22_v1  ;;  %s45_s19 = sshll.u32 %s115_s18, 4  ;;  %s46_s19 = int_to_ptr.vmem [resolvable:$true] %s45_s19 }
  0x14   :  { %s88_s0 = scalar_lea.vmem %s46_s19, 256  ;;  %p93_p9 = scmp.lt.s32.totalorder %s46_s19, %s46_s19 }
  0x15   :  { %58 = vpow2.f32 %v54_v2  ;;  %p89_p8 = scmp.ne.s32.totalorder %s46_s19, %s88_s0  ;;  %p94_p10 = scmp.lt.s32.totalorder %s88_s0, %s88_s0 }
  0x16   :  { %60 = vpow2.f32 %v55_v3 }
  0x17   :  { %p95_p11 = por %p94_p10, %p93_p9 }
  0x19   :  { %p96_p12 = pnand %p95_p11, %p89_p8 }
  0x1f   :  { %v59_v4 = vpop.eup %58 }
  0x20   :  { %v61_v5 = vpop.eup %60  ;;  %v29_v6 = vadd.f32 1.0, %v59_v4 }
  0x21   :  { %v30_v7 = vadd.f32 1.0, %v61_v5 }
  0x22   :  { %62 = vrcp.f32 %v29_v6 }
  0x23   :  { %64 = vrcp.f32 %v30_v7 }
  0x2c   :  { %v63_v8 = vpop.eup %62 }
  0x2d   :  { %v65_v9 = vpop.eup %64  ;;  %v35_v10 = vmul.f32 %v63_v8, %v21_v0 }
  0x2e   :  { %v36_v11 = vmul.f32 %v65_v9, %v22_v1 }
  0x2f   :  { %37 = vst [vmem:[#allocation5] sm:$0xff] %v35_v10 }
  0x30   :  { %38 = vst [vmem:[#allocation5 + $0x8] sm:$0xff] %v36_v11 }
  0x31   :  { %99 = shalt.err (!%p96_p12)
}
  0x32   :  { %s100_s22 = scalar_lea.hbm %s151_s1, 256 }
  0x33   :  { %p101_p13 = scmp.ne.s32.totalorder %s151_s1, %s100_s22  ;;  %p104_p0 = scmp.lt.u32.totalorder %s100_s22, %s151_s1 }
  0x35   :  { %p106_p1 = pnand %p104_p0, %p101_p13 }
  0x37   :  { %109 = shalt.err (!%p106_p1)
}
  0x38   :  { %48 = dma.vmem_to_hbm [thread:$0]  %s46_s19, 256, %s151_s1, [#allocation4]  }
  0x39   :  { %112 = dma.done.wait [#allocation4], 256  }
  0x3a   :  { %113 = vsyncadd [#allocation4], 4294967040 }
  0x3b   :  { %52 = vsyncpa [#allocation3], 1 }
  0x3c   :  { %53 = vsyncpa [#allocation4], 1 }

</bundles_post_ra>
